<compile_context>
chip_gen: v6e
topology: v6e:2x2x1
jax: 0.10.0
libtpu: 0.0.40
codegen_flags: <defaults>
</compile_context>

<pallas_src>
import functools
import math

import jax
import jax.numpy as jnp
from jax.experimental import pallas as pl


# ---------------------------------------------------------------------------
# Fused Pallas kernel: projections + batched attention + output projection
# ---------------------------------------------------------------------------

def _fused_mha_kernel(q_ref, k_ref, v_ref,
                      wq_ref, bq_ref, wk_ref, bk_ref, wv_ref, bv_ref,
                      wo_ref, bo_ref, o_ref, *,
                      b_s, nq, nk, d_k, d_v, h):
    f32 = jnp.float32
    scale = 1.0 / math.sqrt(d_k)

    # ---- input projections: three full-width MXU matmuls --------------------
    qp = jnp.dot(q_ref[...], wq_ref[...], preferred_element_type=f32) + bq_ref[...]  # (b_s*nq, h*d_k)
    kp = jnp.dot(k_ref[...], wk_ref[...], preferred_element_type=f32) + bk_ref[...]  # (b_s*nk, h*d_k)
    vp = jnp.dot(v_ref[...], wv_ref[...], preferred_element_type=f32) + bv_ref[...]  # (b_s*nk, h*d_v)

    # ---- move heads off the lane axis ONCE: (b_s*n, h*d) -> (h*b_s, n, d) ----
    # Static d-aligned lane slices; the row split (b_s*n -> (b_s, n)) is at the
    # 8-sublane tile boundary and the leading-dim merges are free.
    def split_heads(x, n, d):
        parts = [x[:, i * d:(i + 1) * d].reshape(1, b_s, n, d) for i in range(h)]
        return jnp.concatenate(parts, axis=0).reshape(h * b_s, n, d)

    qh = split_heads(qp, nq, d_k)                                      # (h*b_s, nq, d_k)
    kh = split_heads(kp, nk, d_k)                                      # (h*b_s, nk, d_k)
    vh = split_heads(vp, nk, d_v)                                      # (h*b_s, nk, d_v)

    # ---- one batched QK^T over all (head, batch) pairs -----------------------
    att = jnp.einsum('bqd,bkd->bqk', qh, kh,
                     preferred_element_type=f32) * scale               # (h*b_s, nq, nk)

    # ---- single batched softmax over the whole score tensor ------------------
    att = att - jnp.max(att, axis=-1, keepdims=True)
    p = jnp.exp(att)
    denom = jnp.sum(p, axis=-1, keepdims=True)
    r = pl.reciprocal(denom, approx=True)          # EUP vrcp
    r = r * (2.0 - denom * r)                      # one Newton step -> ~exact
    p = p * r
    # dropout is identity here (eval mode)

    # ---- one batched P @ V ----------------------------------------------------
    oh = jnp.einsum('bqk,bkd->bqd', p, vh, preferred_element_type=f32)  # (h*b_s, nq, d_v)

    # ---- gather heads back onto lanes once, single output projection ---------
    oh4 = oh.reshape(h, b_s, nq, d_v)
    oc = jnp.concatenate([oh4[i] for i in range(h)], axis=-1)           # (b_s, nq, h*d_v)
    oc = oc.reshape(b_s * nq, h * d_v)
    out = jnp.dot(oc, wo_ref[...], preferred_element_type=f32) + bo_ref[...]  # (b_s*nq, d_model)
    o_ref[...] = out.astype(o_ref.dtype)           # one full-block unmasked store


def _full_spec(shape):
    return pl.BlockSpec(shape, lambda: (0,) * len(shape))


def scaled_dot_product_attention(params, queries, keys, values, d_k, d_v, h):
    b_s, nq, d_model = queries.shape
    nk = keys.shape[1]
    hk, hv = h * d_k, h * d_v

    args = (
        queries.reshape(b_s * nq, d_model),
        keys.reshape(b_s * nk, d_model),
        values.reshape(b_s * nk, d_model),
        params["wq"], params["bq"].reshape(1, hk),
        params["wk"], params["bk"].reshape(1, hk),
        params["wv"], params["bv"].reshape(1, hv),
        params["wo"], params["bo"].reshape(1, d_model),
    )
    kernel = functools.partial(_fused_mha_kernel, b_s=b_s, nq=nq, nk=nk,
                               d_k=d_k, d_v=d_v, h=h)
    out2d = pl.pallas_call(
        kernel,
        out_shape=jax.ShapeDtypeStruct((b_s * nq, d_model), jnp.float32),
        in_specs=[_full_spec(a.shape) for a in args],
        out_specs=_full_spec((b_s * nq, d_model)),
    )(*args)
    return out2d.reshape(b_s, nq, d_model)


# ---------------------------------------------------------------------------
# Parameter init (matches nn.Linear default uniform init scheme)
# ---------------------------------------------------------------------------

def init_params(key, d_model, d_k, d_v, h):
    ks = jax.random.split(key, 8)

    def lin_init(kw, kb, fan_in, fan_out):
        bound = 1.0 / math.sqrt(fan_in)
        w = jax.random.uniform(kw, (fan_in, fan_out), jnp.float32, -bound, bound)
        b = jax.random.uniform(kb, (fan_out,), jnp.float32, -bound, bound)
        return w, b

    wq, bq = lin_init(ks[0], ks[1], d_model, h * d_k)
    wk, bk = lin_init(ks[2], ks[3], d_model, h * d_k)
    wv, bv = lin_init(ks[4], ks[5], d_model, h * d_v)
    wo, bo = lin_init(ks[6], ks[7], h * d_v, d_model)
    return dict(wq=wq, bq=bq, wk=wk, bk=bk, wv=wv, bv=bv, wo=wo, bo=bo)


# ---------------------------------------------------------------------------
# Pure-JAX reference (for sanity check)
# ---------------------------------------------------------------------------

def reference(params, queries, keys, values, d_k, d_v, h):
    b_s, nq, d_model = queries.shape
    nk = keys.shape[1]
    q = (queries @ params["wq"] + params["bq"]).reshape(b_s, nq, h, d_k).transpose(0, 2, 1, 3)
    k = (keys @ params["wk"] + params["bk"]).reshape(b_s, nk, h, d_k).transpose(0, 2, 3, 1)
    v = (values @ params["wv"] + params["bv"]).reshape(b_s, nk, h, d_v).transpose(0, 2, 1, 3)
    att = (q @ k) / math.sqrt(d_k)
    att = jax.nn.softmax(att, axis=-1)
    out = (att @ v).transpose(0, 2, 1, 3).reshape(b_s, nq, h * d_v)
    return (out @ params["wo"] + params["bo"])


# ---------------------------------------------------------------------------
# Main
# ---------------------------------------------------------------------------

if __name__ == "__main__":
    d_model, d_k, d_v, h = 32, 16, 16, 4
    b_s, nq, nk = 2, 8, 8

    key = jax.random.PRNGKey(0)
    kparam, kq, kk, kv = jax.random.split(key, 4)
    params = init_params(kparam, d_model, d_k, d_v, h)

    queries = jax.random.normal(kq, (b_s, nq, d_model), jnp.float32)
    keys = jax.random.normal(kk, (b_s, nk, d_model), jnp.float32)
    values = jax.random.normal(kv, (b_s, nk, d_model), jnp.float32)

    out = scaled_dot_product_attention(params, queries, keys, values, d_k, d_v, h)
    out = jax.block_until_ready(out)

    ref = reference(params, queries, keys, values, d_k, d_v, h)
    assert out.shape == (b_s, nq, d_model)
    assert jnp.allclose(out, ref, atol=1e-4, rtol=1e-4), "mismatch vs reference"

    print("KERNEL_OK")
</pallas_src>

<mosaic_0001>
module attributes {stable_mosaic.version = 11 : i64} {
  func.func @_fused_mha_kernel(%arg0: memref<16x32xf32, #tpu.memory_space<vmem>>, %arg1: memref<16x32xf32, #tpu.memory_space<vmem>>, %arg2: memref<16x32xf32, #tpu.memory_space<vmem>>, %arg3: memref<32x64xf32, #tpu.memory_space<vmem>>, %arg4: memref<1x64xf32, #tpu.memory_space<vmem>>, %arg5: memref<32x64xf32, #tpu.memory_space<vmem>>, %arg6: memref<1x64xf32, #tpu.memory_space<vmem>>, %arg7: memref<32x64xf32, #tpu.memory_space<vmem>>, %arg8: memref<1x64xf32, #tpu.memory_space<vmem>>, %arg9: memref<64x32xf32, #tpu.memory_space<vmem>>, %arg10: memref<1x32xf32, #tpu.memory_space<vmem>>, %arg11: memref<16x32xf32, #tpu.memory_space<vmem>>) attributes {dimension_semantics = [], scalar_prefetch = 0 : i64, scratch_operands = 0 : i64, tpu.core_type = #tpu.core_type<tc>} {
    %c0 = arith.constant 0 : index
    %c0_0 = arith.constant 0 : index
    %0 = vector.load %arg0[%c0, %c0_0] : memref<16x32xf32, #tpu.memory_space<vmem>>, vector<16x32xf32>
    %c0_1 = arith.constant 0 : index
    %c0_2 = arith.constant 0 : index
    %1 = vector.load %arg3[%c0_1, %c0_2] : memref<32x64xf32, #tpu.memory_space<vmem>>, vector<32x64xf32>
    %cst = arith.constant dense<0.000000e+00> : vector<16x64xf32>
    %2 = tpu.matmul %0, %1, %cst {dimension_numbers = #tpu.dot_dimension_numbers<[1], [0], [0], [1], [0, 0, 1, 1], [], []>} : vector<16x32xf32>, vector<32x64xf32>, vector<16x64xf32> -> vector<16x64xf32>
    %c0_3 = arith.constant 0 : index
    %c0_4 = arith.constant 0 : index
    %3 = vector.load %arg4[%c0_3, %c0_4] : memref<1x64xf32, #tpu.memory_space<vmem>>, vector<1x64xf32>
    %4 = vector.broadcast %3 : vector<1x64xf32> to vector<16x64xf32>
    %5 = arith.addf %2, %4 : vector<16x64xf32>
    %c0_5 = arith.constant 0 : index
    %c0_6 = arith.constant 0 : index
    %6 = vector.load %arg1[%c0_5, %c0_6] : memref<16x32xf32, #tpu.memory_space<vmem>>, vector<16x32xf32>
    %c0_7 = arith.constant 0 : index
    %c0_8 = arith.constant 0 : index
    %7 = vector.load %arg5[%c0_7, %c0_8] : memref<32x64xf32, #tpu.memory_space<vmem>>, vector<32x64xf32>
    %cst_9 = arith.constant dense<0.000000e+00> : vector<16x64xf32>
    %8 = tpu.matmul %6, %7, %cst_9 {dimension_numbers = #tpu.dot_dimension_numbers<[1], [0], [0], [1], [0, 0, 1, 1], [], []>} : vector<16x32xf32>, vector<32x64xf32>, vector<16x64xf32> -> vector<16x64xf32>
    %c0_10 = arith.constant 0 : index
    %c0_11 = arith.constant 0 : index
    %9 = vector.load %arg6[%c0_10, %c0_11] : memref<1x64xf32, #tpu.memory_space<vmem>>, vector<1x64xf32>
    %10 = vector.broadcast %9 : vector<1x64xf32> to vector<16x64xf32>
    %11 = arith.addf %8, %10 : vector<16x64xf32>
    %c0_12 = arith.constant 0 : index
    %c0_13 = arith.constant 0 : index
    %12 = vector.load %arg2[%c0_12, %c0_13] : memref<16x32xf32, #tpu.memory_space<vmem>>, vector<16x32xf32>
    %c0_14 = arith.constant 0 : index
    %c0_15 = arith.constant 0 : index
    %13 = vector.load %arg7[%c0_14, %c0_15] : memref<32x64xf32, #tpu.memory_space<vmem>>, vector<32x64xf32>
    %cst_16 = arith.constant dense<0.000000e+00> : vector<16x64xf32>
    %14 = tpu.matmul %12, %13, %cst_16 {dimension_numbers = #tpu.dot_dimension_numbers<[1], [0], [0], [1], [0, 0, 1, 1], [], []>} : vector<16x32xf32>, vector<32x64xf32>, vector<16x64xf32> -> vector<16x64xf32>
    %c0_17 = arith.constant 0 : index
    %c0_18 = arith.constant 0 : index
    %15 = vector.load %arg8[%c0_17, %c0_18] : memref<1x64xf32, #tpu.memory_space<vmem>>, vector<1x64xf32>
    %16 = vector.broadcast %15 : vector<1x64xf32> to vector<16x64xf32>
    %17 = arith.addf %14, %16 : vector<16x64xf32>
    %18 = vector.extract_strided_slice %5 {offsets = [0, 0], sizes = [16, 16], strides = [1, 1]} : vector<16x64xf32> to vector<16x16xf32>
    %19 = vector.shape_cast %18 : vector<16x16xf32> to vector<1x2x8x16xf32>
    %20 = vector.extract_strided_slice %5 {offsets = [0, 16], sizes = [16, 16], strides = [1, 1]} : vector<16x64xf32> to vector<16x16xf32>
    %21 = vector.shape_cast %20 : vector<16x16xf32> to vector<1x2x8x16xf32>
    %22 = vector.extract_strided_slice %5 {offsets = [0, 32], sizes = [16, 16], strides = [1, 1]} : vector<16x64xf32> to vector<16x16xf32>
    %23 = vector.shape_cast %22 : vector<16x16xf32> to vector<1x2x8x16xf32>
    %24 = vector.extract_strided_slice %5 {offsets = [0, 48], sizes = [16, 16], strides = [1, 1]} : vector<16x64xf32> to vector<16x16xf32>
    %25 = vector.shape_cast %24 : vector<16x16xf32> to vector<1x2x8x16xf32>
    %26 = tpu.concatenate %19, %21, %23, %25 in 0 : vector<1x2x8x16xf32>, vector<1x2x8x16xf32>, vector<1x2x8x16xf32>, vector<1x2x8x16xf32> -> vector<4x2x8x16xf32>
    %27 = vector.shape_cast %26 : vector<4x2x8x16xf32> to vector<8x8x16xf32>
    %28 = vector.extract_strided_slice %11 {offsets = [0, 0], sizes = [16, 16], strides = [1, 1]} : vector<16x64xf32> to vector<16x16xf32>
    %29 = vector.shape_cast %28 : vector<16x16xf32> to vector<1x2x8x16xf32>
    %30 = vector.extract_strided_slice %11 {offsets = [0, 16], sizes = [16, 16], strides = [1, 1]} : vector<16x64xf32> to vector<16x16xf32>
    %31 = vector.shape_cast %30 : vector<16x16xf32> to vector<1x2x8x16xf32>
    %32 = vector.extract_strided_slice %11 {offsets = [0, 32], sizes = [16, 16], strides = [1, 1]} : vector<16x64xf32> to vector<16x16xf32>
    %33 = vector.shape_cast %32 : vector<16x16xf32> to vector<1x2x8x16xf32>
    %34 = vector.extract_strided_slice %11 {offsets = [0, 48], sizes = [16, 16], strides = [1, 1]} : vector<16x64xf32> to vector<16x16xf32>
    %35 = vector.shape_cast %34 : vector<16x16xf32> to vector<1x2x8x16xf32>
    %36 = tpu.concatenate %29, %31, %33, %35 in 0 : vector<1x2x8x16xf32>, vector<1x2x8x16xf32>, vector<1x2x8x16xf32>, vector<1x2x8x16xf32> -> vector<4x2x8x16xf32>
    %37 = vector.shape_cast %36 : vector<4x2x8x16xf32> to vector<8x8x16xf32>
    %38 = vector.extract_strided_slice %17 {offsets = [0, 0], sizes = [16, 16], strides = [1, 1]} : vector<16x64xf32> to vector<16x16xf32>
    %39 = vector.shape_cast %38 : vector<16x16xf32> to vector<1x2x8x16xf32>
    %40 = vector.extract_strided_slice %17 {offsets = [0, 16], sizes = [16, 16], strides = [1, 1]} : vector<16x64xf32> to vector<16x16xf32>
    %41 = vector.shape_cast %40 : vector<16x16xf32> to vector<1x2x8x16xf32>
    %42 = vector.extract_strided_slice %17 {offsets = [0, 32], sizes = [16, 16], strides = [1, 1]} : vector<16x64xf32> to vector<16x16xf32>
    %43 = vector.shape_cast %42 : vector<16x16xf32> to vector<1x2x8x16xf32>
    %44 = vector.extract_strided_slice %17 {offsets = [0, 48], sizes = [16, 16], strides = [1, 1]} : vector<16x64xf32> to vector<16x16xf32>
    %45 = vector.shape_cast %44 : vector<16x16xf32> to vector<1x2x8x16xf32>
    %46 = tpu.concatenate %39, %41, %43, %45 in 0 : vector<1x2x8x16xf32>, vector<1x2x8x16xf32>, vector<1x2x8x16xf32>, vector<1x2x8x16xf32> -> vector<4x2x8x16xf32>
    %47 = vector.shape_cast %46 : vector<4x2x8x16xf32> to vector<8x8x16xf32>
    "tpu.trace_start"() <{level = 10 : i32, message = "bqd,bkd->bqk"}> : () -> ()
    %cst_19 = arith.constant dense<0.000000e+00> : vector<8x8x8xf32>
    %48 = tpu.matmul %27, %37, %cst_19 {dimension_numbers = #tpu.dot_dimension_numbers<[2], [2], [1], [1], [0, 0, 0, 1, 1, 1], [0], [0]>} : vector<8x8x16xf32>, vector<8x8x16xf32>, vector<8x8x8xf32> -> vector<8x8x8xf32>
    "tpu.trace_stop"() : () -> ()
    %cst_20 = arith.constant 2.500000e-01 : f32
    %49 = vector.broadcast %cst_20 : f32 to vector<8x8x8xf32>
    %50 = arith.mulf %48, %49 : vector<8x8x8xf32>
    %cst_21 = arith.constant dense<0xFF800000> : vector<8x8xf32>
    %51 = vector.multi_reduction <maximumf>, %50, %cst_21 [2] : vector<8x8x8xf32> to vector<8x8xf32>
    %52 = vector.shape_cast %51 : vector<8x8xf32> to vector<8x8x1xf32>
    %53 = vector.broadcast %52 : vector<8x8x1xf32> to vector<8x8x8xf32>
    %54 = arith.subf %50, %53 : vector<8x8x8xf32>
    %55 = math.exp %54 : vector<8x8x8xf32>
    %cst_22 = arith.constant dense<0.000000e+00> : vector<8x8xf32>
    %56 = vector.multi_reduction <add>, %55, %cst_22 [2] : vector<8x8x8xf32> to vector<8x8xf32>
    %57 = vector.shape_cast %56 : vector<8x8xf32> to vector<8x8x1xf32>
    %58 = tpu.reciprocal %57 {approx = true} : vector<8x8x1xf32> -> vector<8x8x1xf32>
    %59 = arith.mulf %57, %58 : vector<8x8x1xf32>
    %cst_23 = arith.constant 2.000000e+00 : f32
    %60 = vector.broadcast %cst_23 : f32 to vector<8x8x1xf32>
    %61 = arith.subf %60, %59 : vector<8x8x1xf32>
    %62 = arith.mulf %58, %61 : vector<8x8x1xf32>
    %63 = vector.broadcast %62 : vector<8x8x1xf32> to vector<8x8x8xf32>
    %64 = arith.mulf %55, %63 : vector<8x8x8xf32>
    "tpu.trace_start"() <{level = 10 : i32, message = "bqk,bkd->bqd"}> : () -> ()
    %cst_24 = arith.constant dense<0.000000e+00> : vector<8x8x16xf32>
    %65 = tpu.matmul %64, %47, %cst_24 {dimension_numbers = #tpu.dot_dimension_numbers<[2], [1], [1], [2], [0, 0, 0, 1, 1, 2], [0], [0]>} : vector<8x8x8xf32>, vector<8x8x16xf32>, vector<8x8x16xf32> -> vector<8x8x16xf32>
    "tpu.trace_stop"() : () -> ()
    %66 = vector.shape_cast %65 : vector<8x8x16xf32> to vector<4x2x8x16xf32>
    %67 = vector.extract_strided_slice %66 {offsets = [0, 0, 0, 0], sizes = [1, 2, 8, 16], strides = [1, 1, 1, 1]} : vector<4x2x8x16xf32> to vector<1x2x8x16xf32>
    %68 = vector.shape_cast %67 : vector<1x2x8x16xf32> to vector<2x8x16xf32>
    %69 = vector.extract_strided_slice %66 {offsets = [1, 0, 0, 0], sizes = [1, 2, 8, 16], strides = [1, 1, 1, 1]} : vector<4x2x8x16xf32> to vector<1x2x8x16xf32>
    %70 = vector.shape_cast %69 : vector<1x2x8x16xf32> to vector<2x8x16xf32>
    %71 = vector.extract_strided_slice %66 {offsets = [2, 0, 0, 0], sizes = [1, 2, 8, 16], strides = [1, 1, 1, 1]} : vector<4x2x8x16xf32> to vector<1x2x8x16xf32>
    %72 = vector.shape_cast %71 : vector<1x2x8x16xf32> to vector<2x8x16xf32>
    %73 = vector.extract_strided_slice %66 {offsets = [3, 0, 0, 0], sizes = [1, 2, 8, 16], strides = [1, 1, 1, 1]} : vector<4x2x8x16xf32> to vector<1x2x8x16xf32>
    %74 = vector.shape_cast %73 : vector<1x2x8x16xf32> to vector<2x8x16xf32>
    %75 = tpu.concatenate %68, %70, %72, %74 in 2 : vector<2x8x16xf32>, vector<2x8x16xf32>, vector<2x8x16xf32>, vector<2x8x16xf32> -> vector<2x8x64xf32>
    %76 = vector.shape_cast %75 : vector<2x8x64xf32> to vector<16x64xf32>
    %c0_25 = arith.constant 0 : index
    %c0_26 = arith.constant 0 : index
    %77 = vector.load %arg9[%c0_25, %c0_26] : memref<64x32xf32, #tpu.memory_space<vmem>>, vector<64x32xf32>
    %cst_27 = arith.constant dense<0.000000e+00> : vector<16x32xf32>
    %78 = tpu.matmul %76, %77, %cst_27 {dimension_numbers = #tpu.dot_dimension_numbers<[1], [0], [0], [1], [0, 0, 1, 1], [], []>} : vector<16x64xf32>, vector<64x32xf32>, vector<16x32xf32> -> vector<16x32xf32>
    %c0_28 = arith.constant 0 : index
    %c0_29 = arith.constant 0 : index
    %79 = vector.load %arg10[%c0_28, %c0_29] : memref<1x32xf32, #tpu.memory_space<vmem>>, vector<1x32xf32>
    %80 = vector.broadcast %79 : vector<1x32xf32> to vector<16x32xf32>
    %81 = arith.addf %78, %80 : vector<16x32xf32>
    %c0_30 = arith.constant 0 : index
    %c0_31 = arith.constant 0 : index
    %82 = vector.load %arg11[%c0_30, %c0_31] : memref<16x32xf32, #tpu.memory_space<vmem>>, vector<16x32xf32>
    tpu.vector_store %arg11[%c0_30, %c0_31], %81 {strides = array<i32>} : memref<16x32xf32, #tpu.memory_space<vmem>>, vector<16x32xf32>,
    return
  }
}

</mosaic_0001>

<bundles_post_ra>
// kernel: tpu_custom_call.1
= control target key start
LH: loop header
LB: loop body
LE: loop exit
PB: predicated region body
PF: predicated region fallthrough
CT: control target
= control target key end

     0   :  { %16 = vsyncpa [#allocation3], 0  ;;  %s2549_s0 = inlined_call_operand.hbm [shape: f32[16,32], index: 0, kind: input, shape index: {}]   ;;  %s2550_s1 = inlined_call_operand.hbm [shape: f32[16,32], index: 1, kind: input, shape index: {}]   ;;  %s2551_s2 = inlined_call_operand.hbm [shape: f32[16,32], index: 2, kind: input, shape index: {}]   ;;  %s2552_s3 = inlined_call_operand.vmem [shape: f32[32,64], index: 3, kind: input, shape index: {}]   ;;  %s2553_s4 = inlined_call_operand.vmem [shape: f32[1,64], index: 4, kind: input, shape index: {}]   ;;  %s2554_s5 = inlined_call_operand.vmem [shape: f32[32,64], index: 5, kind: input, shape index: {}]   ;;  %s2555_s6 = inlined_call_operand.vmem [shape: f32[1,64], index: 6, kind: input, shape index: {}]   ;;  %s2556_s7 = inlined_call_operand.vmem [shape: f32[32,64], index: 7, kind: input, shape index: {}]   ;;  %s2557_s8 = inlined_call_operand.vmem [shape: f32[1,64], index: 8, kind: input, shape index: {}]   ;;  %s2558_s9 = inlined_call_operand.vmem [shape: f32[64,32], index: 9, kind: input, shape index: {}]   ;;  %s2559_s10 = inlined_call_operand.vmem [shape: f32[1,32], index: 10, kind: input, shape index: {}]   ;;  %s2560_s11 = inlined_call_operand.hbm [shape: f32[16,32], index: 11, kind: output, shape index: {}]  }
   0x1   :  { %17 = vsyncpa [#allocation6], 0 }
   0x2   :  { %18 = vsyncpa [#allocation4], 0  ;;  %s2217_s17 = smov [#allocation5]   ;;  %s2218_s19 = smov [#allocation2]  }
   0x3   :  { %s36_s18 = sshll.u32 %s2217_s17, 4  ;;  %s24_s20 = sshll.u32 %s2218_s19, 4  ;;  %s37_s18 = int_to_ptr.vmem [resolvable:$true] %s36_s18  ;;  %s25_s20 = int_to_ptr.vmem [resolvable:$true] %s24_s20 }
   0x4   :  { %s2139_s21 = scalar_lea.vmem %s37_s18, 256  ;;  %p2144_p1 = scmp.lt.s32.totalorder %s37_s18, %s37_s18 }
   0x5   :  { %p2140_p0 = scmp.ne.s32.totalorder %s37_s18, %s2139_s21  ;;  %p2145_p2 = scmp.lt.s32.totalorder %s2139_s21, %s2139_s21 }
   0x7   :  { %p2146_p3 = por %p2145_p2, %p2144_p1 }
   0x9   :  { %p2147_p4 = pnand %p2146_p3, %p2140_p0 }
   0xb   :  { %2150 = shalt.err (!%p2147_p4)
}
   0xc   :  { %s2219_s22 = smov 128   ;;  %s2220_s23 = smov 8  }
   0xd   :  { %42 = dma.hbm_to_vmem [thread:$0]  %s2550_s1, 256, %s37_s18, [#allocation6], %s2219_s22, %s2219_s22, %s2220_s23  }
   0xe   :  { %s2159_s26 = scalar_lea.vmem %s25_s20, 256  ;;  %p2164_p6 = scmp.lt.s32.totalorder %s25_s20, %s25_s20 }
   0xf   :  { %p2160_p5 = scmp.ne.s32.totalorder %s25_s20, %s2159_s26  ;;  %p2165_p7 = scmp.lt.s32.totalorder %s2159_s26, %s2159_s26 }
  0x11   :  { %p2166_p8 = por %p2165_p7, %p2164_p6 }
  0x13   :  { %p2167_p9 = pnand %p2166_p8, %p2160_p5 }
  0x15   :  { %2170 = shalt.err (!%p2167_p9)
}
  0x16   :  { %30 = dma.hbm_to_vmem [thread:$0]  %s2549_s0, 256, %s25_s20, [#allocation3], %s2219_s22, %s2219_s22, %s2220_s23  }
  0x17   :  { %s2221_s29 = smov [#allocation7]  }
  0x18   :  { %s48_s30 = sshll.u32 %s2221_s29, 4  ;;  %s49_s30 = int_to_ptr.vmem [resolvable:$true] %s48_s30 }
  0x19   :  { %s2179_s12 = scalar_lea.vmem %s49_s30, 256  ;;  %p2184_p11 = scmp.lt.s32.totalorder %s49_s30, %s49_s30 }
  0x1a   :  { %p2180_p10 = scmp.ne.s32.totalorder %s49_s30, %s2179_s12  ;;  %p2185_p12 = scmp.lt.s32.totalorder %s2179_s12, %s2179_s12 }
  0x1c   :  { %p2186_p13 = por %p2185_p12, %p2184_p11 }
  0x1e   :  { %p2187_p0 = pnand %p2186_p13, %p2180_p10 }
  0x20   :  { %2190 = shalt.err (!%p2187_p0)
}
  0x21   :  { %54 = dma.hbm_to_vmem [thread:$0]  %s2551_s2, 256, %s49_s30, [#allocation6], %s2219_s22, %s2219_s22, %s2220_s23  }
  0x22   :  { %2211 = dma.done.wait [#allocation3], 256  }
  0x23   :  { %2212 = vsyncadd [#allocation3], 4294967040 }
  0x24   :  { %2213 = dma.done.wait [#allocation6], 512  }
  0x25   :  { %2214 = vsyncadd [#allocation6], 4294966784  ;;  %vm93_vm0 = vcmask 261120   ;;  %v85_v0 = vld [vmem:[%s2552_s3 + $0x18] sm:$0xff]  ;;  %v84_v1 = vld [vmem:[%s2552_s3 + $0x10] sm:$0xff]  ;;  %v2222_v12 = vmov 0.0  }
  0x26   :  { %1953 = vmatprep.subr.mxu1 %v85_v0  ;;  %v80_v2 = vld [vmem:[#allocation2] sm:$0xff]  ;;  %v83_v3 = vld [vmem:[%s2552_s3 + $0x8] sm:$0xff]  ;;  %v180_v6 = vld [vmem:[%s2554_s5 + $0x18] sm:$0xff]  ;;  %vm2223_vm1 = vmmov 0   ;;  %s2225_s17 = smov 96   ;;  %vm411_vm2 = vcmask 130048  }
  0x27   :  { %1954 = vmatpush3.msra.mxu1 %v85_v0  ;;  %1961 = vmatprep.mubr.msk.f32.mxu1 %vm93_vm0, %v80_v2  ;;  %v82_v4 = vld [vmem:[%s2552_s3] sm:$0xff]  ;;  %v81_v5 = vld [vmem:[#allocation2 + $0x8] sm:$0xff]  ;;  %v175_v7 = vld [vmem:[#allocation5] sm:$0xff]  ;;  %vm1012_vm3 = vcmask 64512   ;;  %s2228_s20 = smov 32   ;;  %s2229_s14 = smov 48  }
  0x28   :  { %1955 = vmatprep.subr.mxu1 %v84_v1  ;;  %v179_v8 = vld [vmem:[%s2554_s5 + $0x10] sm:$0xff]  ;;  %v178_v9 = vld [vmem:[%s2554_s5 + $0x8] sm:$0xff]  ;;  %v177_v10 = vld [vmem:[%s2554_s5] sm:$0xff]  ;;  %vm1737_vm4 = vcmask 392192   ;;  %vm1755_vm5 = vcmask 523264  }
  0x29   :  { %1956 = vmatpush3.msra.mxu1 %v84_v1  ;;  %v176_v11 = vld [vmem:[#allocation5 + $0x8] sm:$0xff]  ;;  %v273_v14 = vld [vmem:[%s2556_s7 + $0x10] sm:$0xff]  ;;  %v272_v15 = vld [vmem:[%s2556_s7 + $0x8] sm:$0xff] }
  0x2a   :  { %1957 = vmatprep.subr.mxu1 %v83_v3  ;;  %v274_v13 = vld [vmem:[%s2556_s7 + $0x18] sm:$0xff]  ;;  %v271_v16 = vld [vmem:[%s2556_s7] sm:$0xff]  ;;  %v270_v19 = vld [vmem:[#allocation7 + $0x8] sm:$0xff]  ;;  %s2224_s7 = smov 112  }
  0x2b   :  { %1958 = vmatpush3.msra.mxu1 %v83_v3  ;;  %1975 = vmatprep.subr.mxu0 %v274_v13  ;;  %v269_v17 = vld [vmem:[#allocation7] sm:$0xff] }
  0x2c   :  { %1959 = vmatprep.subr.mxu1 %v82_v4  ;;  %1976 = vmatpush3.msra.mxu0 %v274_v13  ;;  %v1857_v18 = vld [vmem:[%s2553_s4] ss:$0 sm:$0xff] }
  0x2d   :  { %1960 = vmatpush3.msra.mxu1 %v82_v4  ;;  %1977 = vmatprep.subr.mxu0 %v273_v14  ;;  %v1860_v24 = vld [vmem:[%s2555_s6] ss:$0 sm:$0xff]  ;;  %s2226_s6 = smov 80  }
  0x2e   :  { %1962 = vmatmul.mubr.msk.f32.vlgmr.msra.gmra.mxu1 %vm93_vm0, %v81_v5  ;;  %1964 = vmatprep.subr.mxu1 %v180_v6  ;;  %v1863_v41 = vld [vmem:[%s2557_s8] ss:$0 sm:$0xff]  ;;  %s2227_s8 = smov 16  }
  0x2f   :  { %1965 = vmatpush3.msra.mxu1 %v180_v6  ;;  %1972 = vmatprep.mubr.msk.f32.mxu1 %vm93_vm0, %v175_v7 }
  0x30   :  { %1966 = vmatprep.subr.mxu1 %v179_v8  ;;  %1978 = vmatpush3.msra.mxu0 %v273_v14 }
  0x31   :  { %1967 = vmatpush3.msra.mxu1 %v179_v8  ;;  %1979 = vmatprep.subr.mxu0 %v272_v15 }
  0x32   :  { %1968 = vmatprep.subr.mxu1 %v178_v9  ;;  %1980 = vmatpush3.msra.mxu0 %v272_v15 }
  0x33   :  { %1969 = vmatpush3.msra.mxu1 %v178_v9  ;;  %1981 = vmatprep.subr.mxu0 %v271_v16 }
  0x34   :  { %1970 = vmatprep.subr.mxu1 %v177_v10  ;;  %1982 = vmatpush3.msra.mxu0 %v271_v16 }
  0x35   :  { %1971 = vmatpush3.msra.mxu1 %v177_v10  ;;  %1983 = vmatprep.mubr.msk.f32.mxu0 %vm93_vm0, %v269_v17 }
  0x36   :  { %1973 = vmatmul.mubr.msk.f32.vlgmr.msra.gmra.mxu1 %vm93_vm0, %v176_v11  ;;  %1986 = vmatprep.subr.mxu1 %v2222_v12 }
  0x37   :  { %1988 = vmatprep.mubr.msk.f32.mxu1 %vm2223_vm1, %v2222_v12  ;;  %1984 = vmatmul.mubr.msk.f32.vlgmr.msra.gmra.mxu0 %vm93_vm0, %v270_v19 }
  0x38   :  { %1996 = vmatprep.subr.mxu0 %v2222_v12  ;;  %1998 = vmatprep.mubr.msk.f32.mxu0 %vm2223_vm1, %v2222_v12 }
  0xee   :  { %v1963_v20 = vpop.f32.mrf.mxu1 }
  0xef   :  { %v172_v21 = vadd.f32 %v1963_v20, %v1857_v18 }
  0xf0   :  { %v166_v22 = vpop.f32.mrf.mxu1 }
  0xf1   :  { %v167_v23 = vadd.f32 %v1857_v18, %v166_v22  ;;  %367 = vrot.lane.b32.xlu1 %v172_v21, %s2224_s7 }
  0xf3   :  { %369 = vrot.lane.b32.xlu0 %v167_v23, %s2225_s17 }
  0xf5   :  { %371 = vrot.lane.b32.xlu1 %v172_v21, %s2225_s17 }
  0xf6   :  { %v1974_v25 = vpop.f32.mrf.mxu1 }
  0xf7   :  { %v266_v26 = vadd.f32 %v1974_v25, %v1860_v24  ;;  %v1985_v42 = vpop.f32.mrf.mxu0 }
  0xf8   :  { %v260_v27 = vpop.f32.mrf.mxu1  ;;  %v2418_v43 = vadd.f32 %v1985_v42, %v1863_v41 }
  0xf9   :  { %v261_v28 = vadd.f32 %v1860_v24, %v260_v27  ;;  %381 = vrot.lane.b32.xlu0 %v266_v26, %s2224_s7  ;;  %365 = vrot.lane.b32.xlu1 %v167_v23, %s2224_s7  ;;  %v354_v44 = vpop.f32.mrf.mxu0 }
  0xfa   :  { %v2420_v45 = vadd.f32 %v1863_v41, %v354_v44 }
  0xfb   :  { %1987 = vmatpush3.xpose.msk.msra.mxu1 %vm411_vm2, %v261_v28 }
  0xfc   :  { %1991 = vmatprep.subr.mxu1 %v2222_v12 }
  0xfd   :  { %379 = vrot.lane.b32.xlu0 %v261_v28, %s2224_s7  ;;  %385 = vrot.lane.b32.xlu1 %v266_v26, %s2225_s17 }
  0xfe   :  { %1989 = vmatmul.mubr.msk.f32.vlgmr.msra.gmra.mxu1 %vm411_vm2, %v167_v23 }
  0xff   :  { %1992 = vmatpush3.xpose.msk.msra.mxu1 %vm411_vm2, %v266_v26  ;;  %1993 = vmatprep.mubr.msk.f32.mxu1 %vm2223_vm1, %v2222_v12 }
 0x100   :  { %2001 = vmatprep.subr.mxu1 %v2222_v12 }
 0x101   :  { %383 = vrot.lane.b32.xlu0 %v261_v28, %s2225_s17  ;;  %389 = vrot.lane.b32.xlu1 %v266_v26, %s2226_s6 }
 0x102   :  { %1994 = vmatmul.mubr.msk.f32.vlgmr.msra.gmra.mxu1 %vm411_vm2, %v172_v21 }
 0x103   :  { %2003 = vmatprep.mubr.msk.f32.mxu1 %vm2223_vm1, %v2222_v12 }
 0x105   :  { %387 = vrot.lane.b32.xlu0 %v261_v28, %s2226_s6  ;;  %375 = vrot.lane.b32.xlu1 %v172_v21, %s2226_s6 }
 0x109   :  { %373 = vrot.lane.b32.xlu0 %v167_v23, %s2226_s6 }
 0x163   :  { %v368_v29 = vpop.permute.xlu1 %367 }
 0x165   :  { %v370_v30 = vpop.permute.xlu0 %369 }
 0x167   :  { %v372_v31 = vpop.permute.xlu1 %371 }
 0x16b   :  { %v382_v32 = vpop.permute.xlu0 %381  ;;  %v366_v33 = vpop.permute.xlu1 %365 }
 0x16c   :  { %2002 = vmatpush3.xpose.msk.msra.mxu1 %vm411_vm2, %v382_v32 }
 0x16d   :  { %2011 = vmatprep.subr.mxu1 %v2222_v12 }
 0x16f   :  { %v380_v34 = vpop.permute.xlu0 %379  ;;  %v386_v35 = vpop.permute.xlu1 %385  ;;  %2004 = vmatmul.mubr.msk.f32.vlgmr.msra.gmra.mxu1 %vm411_vm2, %v368_v29 }
 0x170   :  { %1997 = vmatpush3.xpose.msk.msra.mxu0 %vm411_vm2, %v380_v34  ;;  %2012 = vmatpush3.xpose.msk.msra.mxu1 %vm411_vm2, %v386_v35 }
 0x171   :  { %2013 = vmatprep.mubr.msk.f32.mxu1 %vm2223_vm1, %v2222_v12  ;;  %2006 = vmatprep.subr.mxu0 %v2222_v12 }
 0x172   :  { %2021 = vmatprep.subr.mxu1 %v2222_v12 }
 0x173   :  { %v384_v36 = vpop.permute.xlu0 %383  ;;  %1999 = vmatmul.mubr.msk.f32.vlgmr.msra.gmra.mxu0 %vm411_vm2, %v366_v33  ;;  %v390_v37 = vpop.permute.xlu1 %389  ;;  %2014 = vmatmul.mubr.msk.f32.vlgmr.msra.gmra.mxu1 %vm411_vm2, %v372_v31 }
 0x174   :  { %2007 = vmatpush3.xpose.msk.msra.mxu0 %vm411_vm2, %v384_v36  ;;  %2022 = vmatpush3.xpose.msk.msra.mxu1 %vm411_vm2, %v390_v37 }
 0x175   :  { %2008 = vmatprep.mubr.msk.f32.mxu0 %vm2223_vm1, %v2222_v12  ;;  %2016 = vmatprep.subr.mxu0 %v2222_v12 }
 0x176   :  { %2023 = vmatprep.mubr.msk.f32.mxu1 %vm2223_vm1, %v2222_v12  ;;  %2031 = vmatprep.subr.mxu1 %v2222_v12 }
 0x177   :  { %v388_v38 = vpop.permute.xlu0 %387  ;;  %2009 = vmatmul.mubr.msk.f32.vlgmr.msra.gmra.mxu0 %vm411_vm2, %v370_v30  ;;  %v376_v39 = vpop.permute.xlu1 %375 }
 0x178   :  { %2017 = vmatpush3.xpose.msk.msra.mxu0 %vm411_vm2, %v388_v38  ;;  %2024 = vmatmul.mubr.msk.f32.vlgmr.msra.gmra.mxu1 %vm411_vm2, %v376_v39 }
 0x179   :  { %2018 = vmatprep.mubr.msk.f32.mxu0 %vm2223_vm1, %v2222_v12  ;;  %2026 = vmatprep.subr.mxu0 %v2222_v12 }
 0x17a   :  { %2033 = vmatprep.mubr.msk.f32.mxu1 %vm2223_vm1, %v2222_v12  ;;  %2032 = vmatpush3.msra.mxu1 %v2418_v43 }
 0x17b   :  { %v374_v40 = vpop.permute.xlu0 %373  ;;  %2041 = vmatprep.subr.mxu1 %v2222_v12 }
 0x17c   :  { %2019 = vmatmul.mubr.msk.f32.vlgmr.msra.gmra.mxu0 %vm411_vm2, %v374_v40 }
 0x17d   :  { %2028 = vmatprep.mubr.msk.f32.mxu0 %vm2223_vm1, %v2222_v12  ;;  %2027 = vmatpush3.msra.mxu0 %v2420_v45 }
 0x17e   :  { %2036 = vmatprep.subr.mxu0 %v2222_v12 }
 0x1be   :  { %v482_v46 = vpop.f32.mrf.mxu1 }
 0x1bf   :  { %v1004_v47 = vmul.f32 0.25, %v482_v46 }
 0x1c0   :  { %v1990_v48 = vpop.f32.mrf.mxu1 }
 0x1c1   :  { %v1013_v49 = vsel %vm1012_vm3, %v1004_v47, -inf }
 0x1c2   :  { %1014 = vmax.xlane.f32.xlu0 %v1013_v49  ;;  %v556_v50 = vpop.f32.mrf.mxu1 }
 0x1c3   :  { %v1005_v51 = vmul.f32 0.25, %v556_v50 }
 0x1c4   :  { %v1995_v52 = vpop.f32.mrf.mxu1 }
 0x1c5   :  { %v1016_v53 = vsel %vm1012_vm3, %v1005_v51, -inf }
 0x1c6   :  { %1017 = vmax.xlane.f32.xlu1 %v1016_v53 }
 0x22f   :  { %v704_v54 = vpop.f32.mrf.mxu1 }
 0x230   :  { %v1007_v61 = vmul.f32 0.25, %v704_v54 }
 0x231   :  { %v2005_v55 = vpop.f32.mrf.mxu1 }
 0x232   :  { %v1022_v6 = vsel %vm1012_vm3, %v1007_v61, -inf }
 0x233   :  { %v630_v56 = vpop.f32.mrf.mxu0  ;;  %v852_v57 = vpop.f32.mrf.mxu1 }
 0x234   :  { %v1006_v58 = vmul.f32 0.25, %v630_v56  ;;  %v1009_v3 = vmul.f32 0.25, %v852_v57 }
 0x235   :  { %v2000_v59 = vpop.f32.mrf.mxu0  ;;  %v2015_v60 = vpop.f32.mrf.mxu1 }
 0x236   :  { %v1019_v62 = vsel %vm1012_vm3, %v1006_v58, -inf  ;;  %v1028_v11 = vsel %vm1012_vm3, %v1009_v3, -inf }
 0x237   :  { %v778_v63 = vpop.f32.mrf.mxu0  ;;  %1020 = vmax.xlane.f32.xlu0 %v1019_v62 }
 0x238   :  { %v1008_v0 = vmul.f32 0.25, %v778_v63  ;;  %v1000_v1 = vpop.f32.mrf.mxu1 }
 0x239   :  { %v2010_v2 = vpop.f32.mrf.mxu0  ;;  %v1011_v9 = vmul.f32 0.25, %v1000_v1 }
 0x23a   :  { %v2025_v4 = vpop.f32.mrf.mxu1  ;;  %v1025_v5 = vsel %vm1012_vm3, %v1008_v0, -inf }
 0x23b   :  { %1026 = vmax.xlane.f32.xlu1 %v1025_v5  ;;  %1023 = vmax.xlane.f32.xlu0 %v1022_v6  ;;  %v1034_v14 = vsel %vm1012_vm3, %v1011_v9, -inf }
 0x23c   :  { %v926_v7 = vpop.f32.mrf.mxu0 }
 0x23d   :  { %v2431_v8 = vmul.f32 0.25, %v926_v7 }
 0x23e   :  { %v2020_v10 = vpop.f32.mrf.mxu0 }
 0x23f   :  { %1029 = vmax.xlane.f32.xlu0 %v1028_v11  ;;  %v1031_v13 = vsel %vm1012_vm3, %v2431_v8, -inf }
 0x240   :  { %1032 = vmax.xlane.f32.xlu1 %v1031_v13 }
 0x243   :  { %1035 = vmax.xlane.f32.xlu0 %v1034_v14 }
 0x24b   :  { %v1015_v18 = vpop.xlane.xlu0 %1014 }
 0x24c   :  { %v1037_v19 = vsub.f32 %v1004_v47, %v1015_v18 }
 0x24e   :  { %v1045_v20 = vmul.f32 1.442695, %v1037_v19 }
 0x24f   :  { %v1018_v15 = vpop.xlane.xlu1 %1017 }
 0x250   :  { %v1038_v16 = vsub.f32 %v1005_v51, %v1018_v15 }
 0x251   :  { %393 = vrot.lane.b32.xlu1 %v2420_v45, %s2224_s7 }
 0x252   :  { %v1047_v17 = vmul.f32 1.442695, %v1038_v16 }
 0x254   :  { %2099 = vpow2.f32 %v1047_v17 }
 0x255   :  { %2101 = vpow2.f32 %v1045_v20 }
 0x261   :  { %v2100_v21 = vpop.eup %2099 }
 0x262   :  { %v1064_v22 = vsel %vm1012_vm3, %v2100_v21, 0.0  ;;  %v2440_v23 = vpop.eup %2101 }
 0x263   :  { %1065 = vadd.xlane.f32.xlu0 %v1064_v22  ;;  %v1061_v24 = vsel %vm1012_vm3, %v2440_v23, 0.0 }
 0x275   :  { %1062 = vadd.xlane.f32.xlu1 %v1061_v24 }
 0x2c0   :  { %v1021_v25 = vpop.xlane.xlu0 %1020 }
 0x2c1   :  { %v1039_v26 = vsub.f32 %v1006_v58, %v1021_v25 }
 0x2c3   :  { %v1049_v27 = vmul.f32 1.442695, %v1039_v26 }
 0x2c4   :  { %v1027_v28 = vpop.xlane.xlu1 %1026  ;;  %v1024_v29 = vpop.xlane.xlu0 %1023 }
 0x2c5   :  { %2103 = vpow2.f32 %v1049_v27  ;;  %v1041_v30 = vsub.f32 %v1008_v0, %v1027_v28  ;;  %v1040_v31 = vsub.f32 %v1007_v61, %v1024_v29 }
 0x2c7   :  { %v1053_v32 = vmul.f32 1.442695, %v1041_v30  ;;  %v1051_v33 = vmul.f32 1.442695, %v1040_v31 }
 0x2c8   :  { %v1030_v34 = vpop.xlane.xlu0 %1029 }
 0x2c9   :  { %2105 = vpow2.f32 %v1053_v32  ;;  %v1042_v35 = vsub.f32 %v1009_v3, %v1030_v34  ;;  %v1033_v53 = vpop.xlane.xlu1 %1032 }
 0x2ca   :  { %2107 = vpow2.f32 %v1051_v33  ;;  %v1043_v54 = vsub.f32 %v2431_v8, %v1033_v53 }
 0x2cb   :  { %v1055_v36 = vmul.f32 1.442695, %v1042_v35 }
 0x2cc   :  { %v1036_v37 = vpop.xlane.xlu0 %1035  ;;  %v1057_v58 = vmul.f32 1.442695, %v1043_v54 }
 0x2cd   :  { %2109 = vpow2.f32 %v1055_v36  ;;  %v1044_v38 = vsub.f32 %v1011_v9, %v1036_v37  ;;  %v394_v56 = vpop.permute.xlu1 %393 }
 0x2cf   :  { %v1059_v39 = vmul.f32 1.442695, %v1044_v38 }
 0x2d1   :  { %2111 = vpow2.f32 %v1059_v39 }
 0x2d2   :  { %v2444_v40 = vpop.eup %2103 }
 0x2d3   :  { %v1067_v41 = vsel %vm1012_vm3, %v2444_v40, 0.0 }
 0x2d4   :  { %1068 = vadd.xlane.f32.xlu1 %v1067_v41 }
 0x2d6   :  { %v2448_v42 = vpop.eup %2105 }
 0x2d7   :  { %v2450_v44 = vpop.eup %2107  ;;  %v1073_v46 = vsel %vm1012_vm3, %v2448_v42, 0.0 }
 0x2d8   :  { %1074 = vadd.xlane.f32.xlu1 %v1073_v46  ;;  %v1070_v47 = vsel %vm1012_vm3, %v2450_v44, 0.0 }
 0x2d9   :  { %1071 = vadd.xlane.f32.xlu0 %v1070_v47 }
 0x2da   :  { %v2456_v48 = vpop.eup %2109 }
 0x2db   :  { %v1076_v49 = vsel %vm1012_vm3, %v2456_v48, 0.0 }
 0x2dd   :  { %1077 = vadd.xlane.f32.xlu0 %v1076_v49 }
 0x2de   :  { %v2460_v50 = vpop.eup %2111 }
 0x2df   :  { %v1082_v51 = vsel %vm1012_vm3, %v2460_v50, 0.0 }
 0x2e1   :  { %1083 = vadd.xlane.f32.xlu0 %v1082_v51 }
 0x2e9   :  { %399 = vrot.lane.b32.xlu1 %v2420_v45, %s2225_s17 }
 0x2ec   :  { %v1066_v52 = vpop.xlane.xlu0 %1065 }
 0x2ed   :  { %2113 = vrcp.f32 %v1066_v52  ;;  %401 = vrot.lane.b32.xlu1 %v2418_v43, %s2225_s17  ;;  %s2230_s17 = smov [#allocation8]  }
 0x2ee   :  { %s1844_s4 = sshll.u32 %s2230_s17, 4  ;;  %s1845_s4 = int_to_ptr.vmem [resolvable:$true] %s1844_s4 }
 0x2ef   :  { %s2191_s18 = scalar_lea.vmem %s1845_s4, 256  ;;  %p2196_p2 = scmp.lt.s32.totalorder %s1845_s4, %s1845_s4 }
 0x2f0   :  { %p2192_p1 = scmp.ne.s32.totalorder %s1845_s4, %s2191_s18  ;;  %p2197_p3 = scmp.lt.s32.totalorder %s2191_s18, %s2191_s18 }
 0x2f2   :  { %p2198_p4 = por %p2197_p3, %p2196_p2 }
 0x2f4   :  { %p2199_p5 = pnand %p2198_p4, %p2192_p1 }
 0x2f7   :  { %395 = vrot.lane.b32.xlu0 %v2418_v43, %s2224_s7 }
 0x2fa   :  { %v2114_v55 = vpop.eup %2113 }
 0x2fb   :  { %v1094_v57 = vmul.f32 %v2114_v55, %v1066_v52  ;;  %405 = vrot.lane.b32.xlu0 %v2420_v45, %s2226_s6 }
 0x2fd   :  { %v1102_v59 = vsub.f32 2.0, %v1094_v57 }
 0x2fe   :  { %v1063_v60 = vpop.xlane.xlu1 %1062 }
 0x2ff   :  { %v1110_v61 = vmul.f32 %v2114_v55, %v1102_v59  ;;  %2115 = vrcp.f32 %v1063_v60  ;;  %v1747_v59 = vld [vmem:[%s2558_s9 + $0x38] sm:$0xff] }
 0x300   :  { %2117 = vpow2.f32 %v1057_v58 }
 0x301   :  { %v1118_v62 = vmul.f32 %v2100_v21, %v1110_v61  ;;  %v1745_v61 = vld [vmem:[%s2558_s9 + $0x28] sm:$0xff] }
 0x303   :  { %2034 = vmatmul.mubr.msk.f32.vlgmr.msra.gmra.mxu1 %vm1012_vm3, %v1118_v62  ;;  %v1744_v62 = vld [vmem:[%s2558_s9 + $0x20] sm:$0xff] }
 0x304   :  { %2043 = vmatprep.mubr.msk.f32.mxu1 %vm2223_vm1, %v2222_v12 }
 0x30c   :  { %v2116_v63 = vpop.eup %2115 }
 0x30d   :  { %v2476_v0 = vpop.eup %2117  ;;  %v1093_v1 = vmul.f32 %v2116_v63, %v1063_v60  ;;  %v1746_v60 = vld [vmem:[%s2558_s9 + $0x30] sm:$0xff] }
 0x30e   :  { %v1079_v45 = vsel %vm1012_vm3, %v2476_v0, 0.0 }
 0x30f   :  { %v1101_v2 = vsub.f32 2.0, %v1093_v1  ;;  %v1741_v1 = vld [vmem:[%s2558_s9 + $0x8] sm:$0xff] }
 0x311   :  { %v1109_v3 = vmul.f32 %v2116_v63, %v1101_v2  ;;  %1080 = vadd.xlane.f32.xlu1 %v1079_v45  ;;  %v1743_v63 = vld [vmem:[%s2558_s9 + $0x18] sm:$0xff] }
 0x313   :  { %v1117_v4 = vmul.f32 %v2440_v23, %v1109_v3  ;;  %v1740_v3 = vld [vmem:[%s2558_s9] sm:$0xff] }
 0x315   :  { %2029 = vmatmul.mubr.msk.f32.vlgmr.msra.gmra.mxu0 %vm1012_vm3, %v1117_v4 }
 0x316   :  { %2037 = vmatpush3.msra.mxu0 %v394_v56  ;;  %2038 = vmatprep.mubr.msk.f32.mxu0 %vm2223_vm1, %v2222_v12 }
 0x317   :  { %2046 = vmatprep.subr.mxu0 %v2222_v12 }
 0x322   :  { %407 = vrot.lane.b32.xlu1 %v2418_v43, %s2226_s6 }
 0x35d   :  { %v1069_v5 = vpop.xlane.xlu1 %1068 }
 0x35e   :  { %2119 = vrcp.f32 %v1069_v5 }
 0x361   :  { %v1075_v6 = vpop.xlane.xlu1 %1074 }
 0x362   :  { %2121 = vrcp.f32 %v1075_v6  ;;  %v1072_v7 = vpop.xlane.xlu0 %1071 }
 0x363   :  { %2123 = vrcp.f32 %v1072_v7 }
 0x365   :  { %v400_v22 = vpop.permute.xlu1 %399 }
 0x366   :  { %v1078_v8 = vpop.xlane.xlu0 %1077 }
 0x367   :  { %2125 = vrcp.f32 %v1078_v8 }
 0x369   :  { %v402_v32 = vpop.permute.xlu1 %401 }
 0x36a   :  { %v1084_v9 = vpop.xlane.xlu0 %1083 }
 0x36b   :  { %v2120_v10 = vpop.eup %2119  ;;  %2127 = vrcp.f32 %v1084_v9 }
 0x36c   :  { %v1095_v11 = vmul.f32 %v2120_v10, %v1069_v5 }
 0x36e   :  { %v1103_v13 = vsub.f32 2.0, %v1095_v11  ;;  %v396_v14 = vpop.permute.xlu0 %395 }
 0x36f   :  { %v2122_v15 = vpop.eup %2121  ;;  %2042 = vmatpush3.msra.mxu1 %v396_v14 }
 0x370   :  { %v2124_v16 = vpop.eup %2123  ;;  %v1111_v17 = vmul.f32 %v2120_v10, %v1103_v13  ;;  %v1097_v18 = vmul.f32 %v2122_v15, %v1075_v6  ;;  %2051 = vmatprep.subr.mxu1 %v2222_v12 }
 0x371   :  { %v1096_v43 = vmul.f32 %v2124_v16, %v1072_v7 }
 0x372   :  { %v1119_v19 = vmul.f32 %v2444_v40, %v1111_v17  ;;  %v1105_v20 = vsub.f32 2.0, %v1097_v18  ;;  %v406_v30 = vpop.permute.xlu0 %405 }
 0x373   :  { %v1104_v21 = vsub.f32 2.0, %v1096_v43  ;;  %v1890_v43 = vld [vmem:[%s2559_s10] ss:$0 sm:$0xff] }
 0x374   :  { %v2126_v23 = vpop.eup %2125  ;;  %v1113_v24 = vmul.f32 %v2122_v15, %v1105_v20  ;;  %2039 = vmatmul.mubr.msk.f32.vlgmr.msra.gmra.mxu0 %vm1012_vm3, %v1119_v19 }
 0x375   :  { %v1112_v25 = vmul.f32 %v2124_v16, %v1104_v21  ;;  %v1098_v26 = vmul.f32 %v2126_v23, %v1078_v8  ;;  %2047 = vmatpush3.msra.mxu0 %v400_v22  ;;  %2048 = vmatprep.mubr.msk.f32.mxu0 %vm2223_vm1, %v2222_v12 }
 0x376   :  { %v1121_v27 = vmul.f32 %v2448_v42, %v1113_v24  ;;  %2056 = vmatprep.subr.mxu0 %v2222_v12 }
 0x377   :  { %v1120_v28 = vmul.f32 %v2450_v44, %v1112_v25  ;;  %v1106_v29 = vsub.f32 2.0, %v1098_v26 }
 0x378   :  { %2049 = vmatmul.mubr.msk.f32.vlgmr.msra.gmra.mxu0 %vm1012_vm3, %v1121_v27  ;;  %v2128_v34 = vpop.eup %2127 }
 0x379   :  { %v1114_v31 = vmul.f32 %v2126_v23, %v1106_v29  ;;  %2044 = vmatmul.mubr.msk.f32.vlgmr.msra.gmra.mxu1 %vm1012_vm3, %v1120_v28  ;;  %2057 = vmatpush3.msra.mxu0 %v406_v30  ;;  %v1100_v35 = vmul.f32 %v2128_v34, %v1084_v9 }
 0x37a   :  { %2052 = vmatpush3.msra.mxu1 %v402_v32  ;;  %2053 = vmatprep.mubr.msk.f32.mxu1 %vm2223_vm1, %v2222_v12 }
 0x37b   :  { %v1122_v33 = vmul.f32 %v2456_v48, %v1114_v31  ;;  %2061 = vmatprep.subr.mxu1 %v2222_v12  ;;  %2058 = vmatprep.mubr.msk.f32.mxu0 %vm2223_vm1, %v2222_v12  ;;  %v1108_v36 = vsub.f32 2.0, %v1100_v35 }
 0x37c   :  { %2066 = vmatprep.subr.mxu0 %v1747_v59 }
 0x37d   :  { %2054 = vmatmul.mubr.msk.f32.vlgmr.msra.gmra.mxu1 %vm1012_vm3, %v1122_v33  ;;  %v1116_v37 = vmul.f32 %v2128_v34, %v1108_v36 }
 0x37e   :  { %2063 = vmatprep.mubr.msk.f32.mxu1 %vm2223_vm1, %v2222_v12 }
 0x37f   :  { %v1124_v39 = vmul.f32 %v2460_v50, %v1116_v37 }
 0x39a   :  { %v1081_v38 = vpop.xlane.xlu1 %1080 }
 0x39b   :  { %2129 = vrcp.f32 %v1081_v38 }
 0x39e   :  { %v408_v40 = vpop.permute.xlu1 %407 }
 0x39f   :  { %2062 = vmatpush3.msra.mxu1 %v408_v40 }
 0x3a0   :  { %2064 = vmatmul.mubr.msk.f32.vlgmr.msra.gmra.mxu1 %vm1012_vm3, %v1124_v39 }
 0x3a8   :  { %v2130_v41 = vpop.eup %2129 }
 0x3a9   :  { %v1099_v42 = vmul.f32 %v2130_v41, %v1081_v38 }
 0x3ab   :  { %v1107_v44 = vsub.f32 2.0, %v1099_v42 }
 0x3ad   :  { %v1115_v46 = vmul.f32 %v2130_v41, %v1107_v44 }
 0x3af   :  { %v1123_v47 = vmul.f32 %v2476_v0, %v1115_v46  ;;  %v1742_v0 = vld [vmem:[%s2558_s9 + $0x10] sm:$0xff] }
 0x3b1   :  { %2059 = vmatmul.mubr.msk.f32.vlgmr.msra.gmra.mxu0 %vm1012_vm3, %v1123_v47 }
 0x3b2   :  { %2067 = vmatpush3.msra.mxu0 %v1747_v59 }
 0x3b3   :  { %2068 = vmatprep.subr.mxu0 %v1746_v60 }
 0x3b4   :  { %2069 = vmatpush3.msra.mxu0 %v1746_v60 }
 0x3b5   :  { %2070 = vmatprep.subr.mxu0 %v1745_v61 }
 0x3b6   :  { %2071 = vmatpush3.msra.mxu0 %v1745_v61 }
 0x3b7   :  { %2072 = vmatprep.subr.mxu0 %v1744_v62 }
 0x3b8   :  { %2073 = vmatpush3.msra.mxu0 %v1744_v62 }
 0x3b9   :  { %2074 = vmatprep.subr.mxu0 %v1743_v63 }
 0x3ba   :  { %2075 = vmatpush3.msra.mxu0 %v1743_v63 }
 0x3bb   :  { %2076 = vmatprep.subr.mxu0 %v1742_v0 }
 0x3bc   :  { %2077 = vmatpush3.msra.mxu0 %v1742_v0 }
 0x3bd   :  { %2078 = vmatprep.subr.mxu0 %v1741_v1 }
 0x3be   :  { %2079 = vmatpush3.msra.mxu0 %v1741_v1 }
 0x3bf   :  { %2080 = vmatprep.subr.mxu0 %v1740_v3 }
 0x3c0   :  { %2081 = vmatpush3.msra.mxu0 %v1740_v3 }
 0x3c3   :  { %v1267_v12 = vpop.f32.mrf.mxu1 }
 0x3c5   :  { %v2035_v48 = vpop.f32.mrf.mxu1 }
 0x3d5   :  { %v1194_v49 = vpop.f32.mrf.mxu0 }
 0x3d7   :  { %v2030_v51 = vpop.f32.mrf.mxu0 }
 0x434   :  { %v1340_v52 = vpop.f32.mrf.mxu0 }
 0x435   :  { %1711 = vrot.lane.b32.xlu0 %v1340_v52, %s2227_s8 }
 0x436   :  { %v2040_v50 = vpop.f32.mrf.mxu0 }
 0x438   :  { %v1486_v53 = vpop.f32.mrf.mxu0 }
 0x439   :  { %v1413_v54 = vpop.f32.mrf.mxu1  ;;  %1719 = vrot.lane.b32.xlu0 %v1486_v53, %s2228_s20 }
 0x43a   :  { %1713 = vrot.lane.b32.xlu1 %v1413_v54, %s2227_s8  ;;  %v2050_v55 = vpop.f32.mrf.mxu0 }
 0x43b   :  { %v2045_v56 = vpop.f32.mrf.mxu1 }
 0x43d   :  { %v1559_v57 = vpop.f32.mrf.mxu1 }
 0x43e   :  { %1721 = vrot.lane.b32.xlu1 %v1559_v57, %s2228_s20 }
 0x43f   :  { %v2055_v58 = vpop.f32.mrf.mxu1 }
 0x460   :  { %v1705_v2 = vpop.f32.mrf.mxu1 }
 0x461   :  { %1729 = vrot.lane.b32.xlu1 %v1705_v2, %s2229_s14 }
 0x462   :  { %v2065_v45 = vpop.f32.mrf.mxu1 }
 0x471   :  { %v1632_v4 = vpop.f32.mrf.mxu0 }
 0x472   :  { %1727 = vrot.lane.b32.xlu0 %v1632_v4, %s2229_s14 }
 0x473   :  { %v2060_v5 = vpop.f32.mrf.mxu0 }
 0x4a7   :  { %v1712_v7 = vpop.permute.xlu0 %1711 }
 0x4a8   :  { %v1733_v10 = vsel %vm411_vm2, %v1194_v49, %v1712_v7 }
 0x4ab   :  { %v1720_v9 = vpop.permute.xlu0 %1719 }
 0x4ac   :  { %v1714_v6 = vpop.permute.xlu1 %1713  ;;  %v1735_v13 = vsel %vm93_vm0, %v1733_v10, %v1720_v9 }
 0x4ad   :  { %v1734_v14 = vsel %vm411_vm2, %v1267_v12, %v1714_v6 }
 0x4b0   :  { %v1722_v8 = vpop.permute.xlu1 %1721 }
 0x4b1   :  { %v1736_v16 = vsel %vm93_vm0, %v1734_v14, %v1722_v8 }
 0x4d3   :  { %v1730_v11 = vpop.permute.xlu1 %1729 }
 0x4d4   :  { %v1739_v18 = vsel %vm1737_vm4, %v1736_v16, %v1730_v11 }
 0x4e4   :  { %v1728_v15 = vpop.permute.xlu0 %1727 }
 0x4e5   :  { %v1738_v17 = vsel %vm1737_vm4, %v1735_v13, %v1728_v15 }
 0x4e6   :  { %2082 = vmatprep.mubr.msk.f32.mxu0 %vm1755_vm5, %v1738_v17 }
 0x4e7   :  { %2083 = vmatmul.mubr.msk.f32.vlgmr.msra.gmra.mxu0 %vm1755_vm5, %v1739_v18 }
 0x5a7   :  { %v2084_v19 = vpop.f32.mrf.mxu0 }
 0x5a8   :  { %v1834_v20 = vadd.f32 %v2084_v19, %v1890_v43 }
 0x5a9   :  { %v1828_v21 = vpop.f32.mrf.mxu0 }
 0x5aa   :  { %1838 = vst.msk [vmem:[#allocation8 + $0x8] sm:$0xff] %vm93_vm0, %v1834_v20  ;;  %v1829_v22 = vadd.f32 %v1890_v43, %v1828_v21 }
 0x5ac   :  { %1837 = vst.msk [vmem:[#allocation8] sm:$0xff] %vm93_vm0, %v1829_v22 }
 0x5ad   :  { %2202 = shalt.err (!%p2199_p5)
}
 0x5ae   :  { %1850 = dma.vmem_to_hbm [thread:$0]  %s1845_s4, 256, %s2560_s11, [#allocation4], %s2219_s22, %s2219_s22, %s2220_s23  }
 0x5af   :  { %2215 = dma.done.wait [#allocation4], 256  }
 0x5b0   :  { %2216 = vsyncadd [#allocation4], 4294967040 }
 0x5b1   :  { %1854 = vsyncpa [#allocation3], 1 }
 0x5b2   :  { %1855 = vsyncpa [#allocation6], 1 }
 0x5b3   :  { %1856 = vsyncpa [#allocation4], 1 }

</bundles_post_ra>
